<compile_context>
chip_gen: v5e
topology: v5e:2x2
jax: 0.10.0
libtpu: 0.0.40
codegen_flags: <defaults>
</compile_context>

<pallas_src>
import jax
import jax.numpy as jnp
from jax.experimental import pallas as pl
from jax.experimental.pallas import tpu as pltpu


def _round_up(x, m):
    return ((x + m - 1) // m) * m


# ----------------------------------------------------------------------------
# Kernel
# ----------------------------------------------------------------------------
def critic_kernel(x_ref, w1_ref, b1_ref, w2_ref, b2_ref, w3_ref, b3_ref, o_ref):
    # Layer 1: x is already bf16 + feature-padded -> single MXU matmul,
    # f32 accumulation, bias/ReLU in f32 on the VPU.
    h = jnp.dot(x_ref[...], w1_ref[...], preferred_element_type=jnp.float32)
    h = jnp.maximum(h + b1_ref[...], 0.0)

    # Layer 2: h @ W2 + b2, ReLU.
    h2 = jnp.dot(h.astype(jnp.bfloat16), w2_ref[...],
                 preferred_element_type=jnp.float32)
    h2 = jnp.maximum(h2 + b2_ref[...], 0.0)

    # Layer 3 (out_features == 1): VPU multiply + lane reduction instead of an
    # N=1 MXU matmul; b3 comes from SMEM as a scalar.
    w3 = w3_ref[...].astype(jnp.float32)                      # (1, H2p) row
    o_ref[...] = jnp.sum(h2 * w3, axis=-1, keepdims=True) + b3_ref[0, 0]


# ----------------------------------------------------------------------------
# Tiling heuristic
# ----------------------------------------------------------------------------
def _choose_batch_tile(B, block_b, sublane=16):
    """Pick the batch tile.

    sublane=16: bf16 sublane granule, so x tiles are never sublane-masked.
    Small batch  -> one tile covering the whole (rounded-up) batch.
    Large batch  -> tile that is a multiple of 256 (MXU M granularity) and
                    gives >= 2 grid steps, so the 'parallel' batch axis can be
                    sharded across the two TensorCores on v7x.
    """
    bp = _round_up(B, sublane)
    if bp <= block_b:
        return bp
    half = _round_up(-(-bp // 2), 256)      # ceil(bp/2) rounded to 256
    return min(block_b, half)


# ----------------------------------------------------------------------------
# Wrapper
# ----------------------------------------------------------------------------
def critic_forward(state, action, packed, *, block_b=512):
    """state: (B, num_states), action: (B, num_actions) -> (B, 1) f32.

    `packed` comes from pack_critic_params() (fused / kin- and lane-padded /
    bf16 weights).  block_b caps the batch tile (rows per grid step); use a
    multiple of 256 (128 on v5e if VMEM is tight).
    """
    w1, b1, w2, b2, w3row, b3 = packed
    B = state.shape[0]
    kin = state.shape[1] + action.shape[1]
    kin_p = w1.shape[0]
    h1p = w1.shape[1]
    h2p = w2.shape[1]
    assert kin <= kin_p, (kin, kin_p)

    # Build x once: cast during the concatenate (single bf16 buffer), then one
    # pad for both the batch tile and the kin->128 feature padding.  Padded
    # features hit zero rows of W1, padded batch rows are sliced off below.
    x = jnp.concatenate([state.astype(jnp.bfloat16),
                         action.astype(jnp.bfloat16)], axis=1)

    tb = _choose_batch_tile(B, block_b)
    bp = _round_up(B, tb)
    x = jnp.pad(x, ((0, bp - B), (0, kin_p - kin)))

    # NOTE: w1/w2 have constant index maps so they stay VMEM-resident across
    # grid steps (double-buffered by default: ~1 MB at H=512 — negligible).
    # TODO(synk): if hidden sizes ever reach multi-thousand, single-buffer the
    # weights / add a grid axis over H2p to respect v7x's 64 MiB VMEM.
    out = pl.pallas_call(
        critic_kernel,
        out_shape=jax.ShapeDtypeStruct((bp, 1), jnp.float32),
        grid=(bp // tb,),
        in_specs=[
            pl.BlockSpec((tb, kin_p), lambda i: (i, 0)),         # x (batch tile)
            pl.BlockSpec((kin_p, h1p), lambda i: (0, 0)),        # W1 (resident)
            pl.BlockSpec((1, h1p), lambda i: (0, 0)),            # b1
            pl.BlockSpec((h1p, h2p), lambda i: (0, 0)),          # W2 (resident)
            pl.BlockSpec((1, h2p), lambda i: (0, 0)),            # b2
            pl.BlockSpec((1, h2p), lambda i: (0, 0)),            # W3 row
            pl.BlockSpec((1, 1), lambda i: (0, 0),
                         memory_space=pltpu.SMEM),               # b3 scalar
        ],
        out_specs=pl.BlockSpec((tb, 1), lambda i: (i, 0)),
        compiler_params=pltpu.CompilerParams(
            dimension_semantics=("parallel",),
            vmem_limit_bytes=64 * 1024 * 1024),
    )(x, w1, b1, w2, b2, w3row, b3)
    return out[:B]


# ----------------------------------------------------------------------------
# Parameter construction / packing
# ----------------------------------------------------------------------------
def init_critic_params(key, num_states, num_actions, hidden1=400, hidden2=400,
                       dtype=jnp.float32):
    """Deterministic synthetic init. Weights stored as (in, out), f32."""
    ks = jax.random.split(key, 7)

    def u(k, shape, fan_in):
        bound = 1.0 / jnp.sqrt(jnp.asarray(fan_in, dtype))
        return jax.random.uniform(k, shape, dtype, -bound, bound)

    w1s = u(ks[0], (num_states, hidden1), num_states)
    w1a = u(ks[1], (num_actions, hidden1), num_actions)
    b1 = u(ks[2], (1, hidden1), num_states)
    w2 = u(ks[3], (hidden1, hidden2), hidden1)
    b2 = u(ks[4], (1, hidden2), hidden1)
    w3 = u(ks[5], (hidden2, 1), hidden2)
    b3 = u(ks[6], (1, 1), hidden2)
    return (w1s, w1a, b1, w2, b2, w3, b3)


def pack_critic_params(params, lane=128, weight_dtype=jnp.bfloat16):
    """Fuse fc1 weights, zero-pad kin and the hidden dims to multiples of
    `lane`, cast matmul weights to bf16 (biases stay f32).

    Zero padding is exact: padded x features hit zero W1 rows; padded b1 lanes
    are 0 -> ReLU(0)=0 -> padded W2 rows multiply zeros -> no contribution."""
    w1s, w1a, b1, w2, b2, w3, b3 = params
    kin = w1s.shape[0] + w1a.shape[0]
    h1, h2 = w2.shape
    kin_p = _round_up(kin, lane)
    h1p = _round_up(h1, lane)
    h2p = _round_up(h2, lane)

    w1 = jnp.concatenate([w1s, w1a], axis=0)                   # (kin, h1)
    w1 = jnp.pad(w1, ((0, kin_p - kin), (0, h1p - h1)))
    b1p = jnp.pad(jnp.reshape(b1, (1, -1)), ((0, 0), (0, h1p - h1)))
    w2p = jnp.pad(w2, ((0, h1p - h1), (0, h2p - h2)))
    b2p = jnp.pad(jnp.reshape(b2, (1, -1)), ((0, 0), (0, h2p - h2)))
    w3row = jnp.pad(jnp.reshape(w3, (1, -1)), ((0, 0), (0, h2p - h2)))
    b3p = jnp.reshape(b3, (1, 1)).astype(jnp.float32)

    return (w1.astype(weight_dtype), b1p.astype(jnp.float32),
            w2p.astype(weight_dtype), b2p.astype(jnp.float32),
            w3row.astype(weight_dtype), b3p)


# ----------------------------------------------------------------------------
# References for validation
# ----------------------------------------------------------------------------
def critic_ref_packed(state, action, packed):
    """Plain-JAX reference using the exact packed (bf16/padded) params."""
    w1, b1, w2, b2, w3row, b3 = packed
    kin_p = w1.shape[0]
    x = jnp.concatenate([state.astype(jnp.bfloat16),
                         action.astype(jnp.bfloat16)], axis=1)
    x = jnp.pad(x, ((0, 0), (0, kin_p - x.shape[1])))
    h = jnp.maximum(jnp.dot(x, w1, preferred_element_type=jnp.float32) + b1, 0.0)
    h2 = jnp.maximum(jnp.dot(h.astype(jnp.bfloat16), w2,
                             preferred_element_type=jnp.float32) + b2, 0.0)
    return jnp.sum(h2 * w3row.astype(jnp.float32), axis=-1,
                   keepdims=True) + b3[0, 0]


def critic_ref_f32(state, action, params):
    """Full-precision reference matching the PyTorch module semantics."""
    w1s, w1a, b1, w2, b2, w3, b3 = params
    h = jnp.maximum(state @ w1s + action @ w1a + b1, 0.0)
    h = jnp.maximum(h @ w2 + b2, 0.0)
    return h @ w3 + b3


# ----------------------------------------------------------------------------
# Test
# ----------------------------------------------------------------------------
def _check(out, state, action, packed, params):
    ref_p = critic_ref_packed(state, action, packed)
    ref_f = critic_ref_f32(state, action, params)
    assert out.shape == ref_f.shape, (out.shape, ref_f.shape)
    assert jnp.allclose(out, ref_p, atol=1e-3, rtol=1e-3), \
        f"packed-ref max abs err {jnp.max(jnp.abs(out - ref_p))}"
    assert jnp.allclose(out, ref_f, atol=5e-2, rtol=5e-2), \
        f"f32-ref max abs err {jnp.max(jnp.abs(out - ref_f))}"


if __name__ == "__main__":
    key = jax.random.PRNGKey(0)
    k_p, k_s, k_a, k_p2, k_s2, k_a2 = jax.random.split(key, 6)

    B, num_states, num_actions = 8, 16, 4
    state = jax.random.normal(k_s, (B, num_states), jnp.float32)
    action = jax.random.normal(k_a, (B, num_actions), jnp.float32)

    # --- small hidden (32 -> padded to 128), single-tile path ---
    params_s = init_critic_params(k_p, num_states, num_actions, 32, 32)
    packed_s = pack_critic_params(params_s)
    out_s = critic_forward(state, action, packed_s)
    jax.block_until_ready(out_s)
    _check(out_s, state, action, packed_s, params_s)

    # --- module-default hidden (400 -> padded to 512) validates padding path ---
    params_d = init_critic_params(k_p2, num_states, num_actions, 400, 400)
    packed_d = pack_critic_params(params_d)
    out_d = critic_forward(state, action, packed_d)
    jax.block_until_ready(out_d)
    _check(out_d, state, action, packed_d, params_d)

    # --- multi-tile grid path (small block_b forces several grid steps) ---
    B2 = 40
    state2 = jax.random.normal(k_s2, (B2, num_states), jnp.float32)
    action2 = jax.random.normal(k_a2, (B2, num_actions), jnp.float32)
    out_m = critic_forward(state2, action2, packed_d, block_b=16)
    jax.block_until_ready(out_m)
    _check(out_m, state2, action2, packed_d, params_d)

    print("KERNEL_OK")
</pallas_src>

<mosaic_0001>
module attributes {stable_mosaic.version = 11 : i64} {
  func.func @critic_kernel(%arg0: i32, %arg1: memref<16x128xbf16, #tpu.memory_space<vmem>>, %arg2: memref<128x128xbf16, #tpu.memory_space<vmem>>, %arg3: memref<1x128xf32, #tpu.memory_space<vmem>>, %arg4: memref<128x128xbf16, #tpu.memory_space<vmem>>, %arg5: memref<1x128xf32, #tpu.memory_space<vmem>>, %arg6: memref<1x128xbf16, #tpu.memory_space<vmem>>, %arg7: memref<1x1xf32, #tpu.memory_space<smem>>, %arg8: memref<16x1xf32, #tpu.memory_space<vmem>>) attributes {dimension_semantics = [#tpu.dimension_semantics<parallel>], iteration_bounds = array<i64: 1>, scalar_prefetch = 0 : i64, scratch_operands = 0 : i64, tpu.core_type = #tpu.core_type<tc>, window_params = [{transform_indices = @transform_0, window_bounds = array<i64: 16, 128>}, {pipeline_mode = #tpu.pipeline_mode<synchronous>, transform_indices = @transform_1, window_bounds = array<i64: 128, 128>}, {pipeline_mode = #tpu.pipeline_mode<synchronous>, transform_indices = @transform_2, window_bounds = array<i64: 1, 128>}, {pipeline_mode = #tpu.pipeline_mode<synchronous>, transform_indices = @transform_3, window_bounds = array<i64: 128, 128>}, {pipeline_mode = #tpu.pipeline_mode<synchronous>, transform_indices = @transform_4, window_bounds = array<i64: 1, 128>}, {pipeline_mode = #tpu.pipeline_mode<synchronous>, transform_indices = @transform_5, window_bounds = array<i64: 1, 128>}, {transform_indices = @transform_6, window_bounds = array<i64: 1, 1>}, {transform_indices = @transform_7, window_bounds = array<i64: 16, 1>}]} {
    %c0 = arith.constant 0 : index
    %c0_0 = arith.constant 0 : index
    %0 = vector.load %arg1[%c0, %c0_0] : memref<16x128xbf16, #tpu.memory_space<vmem>>, vector<16x128xbf16>
    %c0_1 = arith.constant 0 : index
    %c0_2 = arith.constant 0 : index
    %1 = vector.load %arg2[%c0_1, %c0_2] : memref<128x128xbf16, #tpu.memory_space<vmem>>, vector<128x128xbf16>
    %cst = arith.constant dense<0.000000e+00> : vector<16x128xf32>
    %2 = tpu.matmul %0, %1, %cst {dimension_numbers = #tpu.dot_dimension_numbers<[1], [0], [0], [1], [0, 0, 1, 1], [], []>} : vector<16x128xbf16>, vector<128x128xbf16>, vector<16x128xf32> -> vector<16x128xf32>
    %c0_3 = arith.constant 0 : index
    %c0_4 = arith.constant 0 : index
    %3 = vector.load %arg3[%c0_3, %c0_4] : memref<1x128xf32, #tpu.memory_space<vmem>>, vector<1x128xf32>
    %4 = vector.broadcast %3 : vector<1x128xf32> to vector<16x128xf32>
    %5 = arith.addf %2, %4 : vector<16x128xf32>
    %cst_5 = arith.constant 0.000000e+00 : f32
    %6 = vector.broadcast %cst_5 : f32 to vector<16x128xf32>
    %7 = arith.maximumf %5, %6 : vector<16x128xf32>
    %8 = arith.truncf %7 : vector<16x128xf32> to vector<16x128xbf16>
    %c0_6 = arith.constant 0 : index
    %c0_7 = arith.constant 0 : index
    %9 = vector.load %arg4[%c0_6, %c0_7] : memref<128x128xbf16, #tpu.memory_space<vmem>>, vector<128x128xbf16>
    %cst_8 = arith.constant dense<0.000000e+00> : vector<16x128xf32>
    %10 = tpu.matmul %8, %9, %cst_8 {dimension_numbers = #tpu.dot_dimension_numbers<[1], [0], [0], [1], [0, 0, 1, 1], [], []>} : vector<16x128xbf16>, vector<128x128xbf16>, vector<16x128xf32> -> vector<16x128xf32>
    %c0_9 = arith.constant 0 : index
    %c0_10 = arith.constant 0 : index
    %11 = vector.load %arg5[%c0_9, %c0_10] : memref<1x128xf32, #tpu.memory_space<vmem>>, vector<1x128xf32>
    %12 = vector.broadcast %11 : vector<1x128xf32> to vector<16x128xf32>
    %13 = arith.addf %10, %12 : vector<16x128xf32>
    %cst_11 = arith.constant 0.000000e+00 : f32
    %14 = vector.broadcast %cst_11 : f32 to vector<16x128xf32>
    %15 = arith.maximumf %13, %14 : vector<16x128xf32>
    %c0_12 = arith.constant 0 : index
    %c0_13 = arith.constant 0 : index
    %16 = vector.load %arg6[%c0_12, %c0_13] : memref<1x128xbf16, #tpu.memory_space<vmem>>, vector<1x128xbf16>
    %17 = arith.extf %16 : vector<1x128xbf16> to vector<1x128xf32>
    %18 = vector.broadcast %17 : vector<1x128xf32> to vector<16x128xf32>
    %19 = arith.mulf %15, %18 : vector<16x128xf32>
    %cst_14 = arith.constant dense<0.000000e+00> : vector<16xf32>
    %20 = vector.multi_reduction <add>, %19, %cst_14 [1] : vector<16x128xf32> to vector<16xf32>
    %21 = vector.shape_cast %20 : vector<16xf32> to vector<16x1xf32>
    %c0_15 = arith.constant 0 : index
    %c0_16 = arith.constant 0 : index
    %22 = memref.load %arg7[%c0_15, %c0_16] : memref<1x1xf32, #tpu.memory_space<smem>>
    %23 = vector.broadcast %22 : f32 to vector<16x1xf32>
    %24 = arith.addf %21, %23 : vector<16x1xf32>
    %c0_17 = arith.constant 0 : index
    %c0_18 = arith.constant 0 : index
    %25 = vector.load %arg8[%c0_17, %c0_18] : memref<16x1xf32, #tpu.memory_space<vmem>>, vector<16x1xf32>
    tpu.vector_store %arg8[%c0_17, %c0_18], %24 {strides = array<i32>} : memref<16x1xf32, #tpu.memory_space<vmem>>, vector<16x1xf32>,
    return
  }
  func.func @transform_0(%arg0: i32) -> (i32, i32) {
    %c0_i32 = arith.constant 0 : i32
    %c0_i32_0 = arith.constant 0 : i32
    return %arg0, %c0_i32 : i32, i32
  }
  func.func @transform_1(%arg0: i32) -> (i32, i32) {
    %c0_i32 = arith.constant 0 : i32
    %c0_i32_0 = arith.constant 0 : i32
    %c0_i32_1 = arith.constant 0 : i32
    return %c0_i32, %c0_i32_0 : i32, i32
  }
  func.func @transform_2(%arg0: i32) -> (i32, i32) {
    %c0_i32 = arith.constant 0 : i32
    %c0_i32_0 = arith.constant 0 : i32
    %c0_i32_1 = arith.constant 0 : i32
    return %c0_i32, %c0_i32_0 : i32, i32
  }
  func.func @transform_3(%arg0: i32) -> (i32, i32) {
    %c0_i32 = arith.constant 0 : i32
    %c0_i32_0 = arith.constant 0 : i32
    %c0_i32_1 = arith.constant 0 : i32
    return %c0_i32, %c0_i32_0 : i32, i32
  }
  func.func @transform_4(%arg0: i32) -> (i32, i32) {
    %c0_i32 = arith.constant 0 : i32
    %c0_i32_0 = arith.constant 0 : i32
    %c0_i32_1 = arith.constant 0 : i32
    return %c0_i32, %c0_i32_0 : i32, i32
  }
  func.func @transform_5(%arg0: i32) -> (i32, i32) {
    %c0_i32 = arith.constant 0 : i32
    %c0_i32_0 = arith.constant 0 : i32
    %c0_i32_1 = arith.constant 0 : i32
    return %c0_i32, %c0_i32_0 : i32, i32
  }
  func.func @transform_6(%arg0: i32) -> (i32, i32) {
    %c0_i32 = arith.constant 0 : i32
    %c0_i32_0 = arith.constant 0 : i32
    %c0_i32_1 = arith.constant 0 : i32
    return %c0_i32, %c0_i32_0 : i32, i32
  }
  func.func @transform_7(%arg0: i32) -> (i32, i32) {
    %c0_i32 = arith.constant 0 : i32
    %c0_i32_0 = arith.constant 0 : i32
    return %arg0, %c0_i32 : i32, i32
  }
}

</mosaic_0001>

<bundles_post_ra>
// kernel: tpu_custom_call.1
= control target key start
LH: loop header
LB: loop body
LE: loop exit
PB: predicated region body
PF: predicated region fallthrough
CT: control target
= control target key end

     0   :  { %13 = vsyncpa [#allocation4], 0  ;;  %s513_s0 = inlined_call_operand.hbm [shape: bf16[16,128], index: 0, kind: input, shape index: {}]   ;;  %s514_s1 = inlined_call_operand.hbm [shape: bf16[128,128], index: 1, kind: input, shape index: {}]   ;;  %s515_s2 = inlined_call_operand.vmem [shape: f32[1,128], index: 2, kind: input, shape index: {}]   ;;  %s516_s3 = inlined_call_operand.hbm [shape: bf16[128,128], index: 3, kind: input, shape index: {}]   ;;  %s517_s4 = inlined_call_operand.vmem [shape: f32[1,128], index: 4, kind: input, shape index: {}]   ;;  %s518_s5 = inlined_call_operand.vmem [shape: bf16[1,128], index: 5, kind: input, shape index: {}]   ;;  %s519_s6 = inlined_call_operand.<no memory space> [shape: f32[1,1], index: 6, kind: input, shape index: {}]   ;;  %s520_s7 = inlined_call_operand.vmem [shape: f32[16,1], index: 7, kind: output, shape index: {}]  }
   0x1   :  { %14 = vsyncpa [#allocation6], 0  ;;  %s32_s26 = sshll.u32 %s514_s1, 4  ;;  %s441_s27 = smov [#allocation5]   ;;  %s33_s26 = int_to_ptr.hbm [resolvable:$true] %s32_s26 }
   0x2   :  { %s34_s28 = sshll.u32 %s441_s27, 4  ;;  %s19_s8 = sshll.u32 %s513_s0, 4  ;;  %s35_s28 = int_to_ptr.vmem [resolvable:$true] %s34_s28  ;;  %s20_s8 = int_to_ptr.hbm [resolvable:$true] %s19_s8 }
   0x3   :  { %s442_s9 = smov 64   ;;  %s443_s10 = smov 4  }
   0x4   :  { %40 = dma.hbm_to_vmem [thread:$0]  %s33_s26, 1024, %s35_s28, [#allocation6], %s442_s9, %s442_s9, %s443_s10  }
   0x5   :  { %s444_s11 = smov [#allocation3]   ;;  %s47_s15 = sshll.u32 %s516_s3, 4  ;;  %s48_s15 = int_to_ptr.hbm [resolvable:$true] %s47_s15 }
   0x6   :  { %s21_s12 = sshll.u32 %s444_s11, 4  ;;  %s445_s1 = smov [#allocation7]   ;;  %s22_s12 = int_to_ptr.vmem [resolvable:$true] %s21_s12 }
   0x7   :  { %27 = dma.hbm_to_vmem [thread:$0]  %s20_s8, 128, %s22_s12, [#allocation4], %s442_s9, %s442_s9, %s443_s10  }
   0x8   :  { %s49_s16 = sshll.u32 %s445_s1, 4  ;;  %s50_s16 = int_to_ptr.vmem [resolvable:$true] %s49_s16 }
   0x9   :  { %55 = dma.hbm_to_vmem [thread:$0]  %s48_s15, 1024, %s50_s16, [#allocation6], %s442_s9, %s442_s9, %s443_s10  }
   0xa   :  { %437 = dma.done.wait [#allocation4], 128  }
   0xb   :  { %438 = vsyncadd [#allocation4], 4294967168 }
   0xc   :  { %439 = dma.done.wait [#allocation6], 2048  }
   0xd   :  { %440 = vsyncadd [#allocation6], 4294965248  ;;  %v349_v0 = vld [vmem:[#allocation5 + $0x38] sm:$0xff]  ;;  %v348_v1 = vld [vmem:[#allocation5 + $0x30] sm:$0xff]  ;;  %v261_v37 = vstv %s519_s6  ;;  %vm264_vm0 = vcmask 7168  }
   0xe   :  { %150 = vmatpush.bf16.msra.mxu0 %v349_v0  ;;  %v357_v2 = vld [vmem:[#allocation7 + $0x38] sm:$0xff]  ;;  %v356_v3 = vld [vmem:[#allocation7 + $0x30] sm:$0xff]  ;;  %v347_v4 = vld [vmem:[#allocation5 + $0x28] sm:$0xff] }
   0xf   :  { %235 = vmatpush.bf16.msra.mxu1 %v357_v2  ;;  %v355_v5 = vld [vmem:[#allocation7 + $0x28] sm:$0xff]  ;;  %v346_v6 = vld [vmem:[#allocation5 + $0x20] sm:$0xff]  ;;  %v345_v8 = vld [vmem:[#allocation5 + $0x18] sm:$0xff] }
  0x10   :  { %v354_v7 = vld [vmem:[#allocation7 + $0x20] sm:$0xff]  ;;  %v344_v9 = vld [vmem:[#allocation5 + $0x10] sm:$0xff]  ;;  %v343_v10 = vld [vmem:[#allocation5 + $0x8] sm:$0xff] }
  0x11   :  { %v342_v11 = vld [vmem:[#allocation5] sm:$0xff]  ;;  %v341_v12 = vld [vmem:[#allocation3] sm:$0xff]  ;;  %v352_v14 = vld [vmem:[#allocation7 + $0x10] sm:$0xff] }
  0x12   :  { %151 = vmatpush.bf16.msra.mxu0 %v348_v1  ;;  %v353_v13 = vld [vmem:[#allocation7 + $0x18] sm:$0xff]  ;;  %v351_v15 = vld [vmem:[#allocation7 + $0x8] sm:$0xff]  ;;  %v350_v16 = vld [vmem:[#allocation7] sm:$0xff] }
  0x13   :  { %236 = vmatpush.bf16.msra.mxu1 %v356_v3  ;;  %v363_v18 = vld [vmem:[%s515_s2] ss:$0 sm:$0xff] }
  0x14   :  { %v251_v25 = vld [vmem:[%s518_s5] sm:$0x1] }
  0x15   :  { %v364_v26 = vld [vmem:[%s517_s4] ss:$0 sm:$0xff]  ;;  %v252_v27 = vunpack.c.l.bf16 %v251_v25 }
  0x16   :  { %152 = vmatpush.bf16.msra.mxu0 %v347_v4 }
  0x17   :  { %237 = vmatpush.bf16.msra.mxu1 %v355_v5  ;;  %v253_v30 = vperm.slane %v252_v27, 0 }
  0x1a   :  { %153 = vmatpush.bf16.msra.mxu0 %v346_v6 }
  0x1b   :  { %238 = vmatpush.bf16.msra.mxu1 %v354_v7 }
  0x1e   :  { %154 = vmatpush.bf16.msra.mxu0 %v345_v8 }
  0x1f   :  { %239 = vmatpush.bf16.msra.mxu1 %v353_v13 }
  0x22   :  { %155 = vmatpush.bf16.msra.mxu0 %v344_v9 }
  0x23   :  { %240 = vmatpush.bf16.msra.mxu1 %v352_v14 }
  0x26   :  { %156 = vmatpush.bf16.msra.mxu0 %v343_v10 }
  0x27   :  { %241 = vmatpush.bf16.msra.mxu1 %v351_v15 }
  0x2a   :  { %157 = vmatpush.bf16.msra.mxu0 %v342_v11 }
  0x2b   :  { %242 = vmatpush.bf16.msra.mxu1 %v350_v16 }
  0x2d   :  { %158 = vmatmul.bf16.vlgmr.msra.gmra.mxu0 %v341_v12 }
  0xaa   :  { %v159_v17 = vpop.f32.mrf.mxu0 }
  0xab   :  { %v160_v19 = vadd.f32 %v363_v18, %v159_v17 }
  0xad   :  { %v164_v22 = vmax.f32 %v160_v19, 0.0 }
  0xb2   :  { %v161_v20 = vpop.f32.mrf.mxu0 }
  0xb3   :  { %v162_v21 = vadd.f32 %v363_v18, %v161_v20 }
  0xb5   :  { %v165_v23 = vmax.f32 %v162_v21, 0.0 }
  0xb7   :  { %v166_v24 = vpack.c.bf16 %v165_v23, %v164_v22 }
  0xb9   :  { %243 = vmatmul.bf16.vlgmr.msra.gmra.mxu1 %v166_v24 }
 0x136   :  { %v244_v28 = vpop.f32.mrf.mxu1 }
 0x137   :  { %v245_v29 = vadd.f32 %v364_v26, %v244_v28 }
 0x139   :  { %v249_v31 = vmax.f32 %v245_v29, 0.0 }
 0x13b   :  { %v254_v32 = vmul.f32 %v253_v30, %v249_v31 }
 0x13d   :  { %256 = vadd.xlane.f32.xlu0 %v254_v32 }
 0x13e   :  { %v246_v33 = vpop.f32.mrf.mxu1 }
 0x13f   :  { %v247_v34 = vadd.f32 %v364_v26, %v246_v33 }
 0x141   :  { %v250_v35 = vmax.f32 %v247_v34, 0.0 }
 0x143   :  { %v255_v36 = vmul.f32 %v253_v30, %v250_v35 }
 0x145   :  { %258 = vadd.xlane.f32.xlu0 %v255_v36 }
 0x1b0   :  { %v257_v38 = vpop.xlane.xlu0 %256 }
 0x1b1   :  { %v262_v39 = vadd.f32 %v261_v37, %v257_v38 }
 0x1b3   :  { %265 = vst.msk [vmem:[%s520_s7] sm:$0xff] %vm264_vm0, %v262_v39 }
 0x1b8   :  { %v259_v40 = vpop.xlane.xlu0 %258 }
 0x1b9   :  { %v263_v41 = vadd.f32 %v261_v37, %v259_v40 }
 0x1bb   :  { %266 = vst.msk [vmem:[%s520_s7 + $0x8] sm:$0xff] %vm264_vm0, %v263_v41 }
 0x1bc   :  { %271 = vsyncpa [#allocation4], 1 }
 0x1bd   :  { %272 = vsyncpa [#allocation6], 1 }

</bundles_post_ra>
